<compile_context>
chip_gen: v7x
topology: tpu7x:2x2x1
jax: 0.10.0
libtpu: 0.0.40
codegen_flags: <defaults>
</compile_context>

<pallas_src>
import functools

import jax
import jax.numpy as jnp
from jax.experimental import pallas as pl
from jax.experimental.pallas import tpu as pltpu


def _lstm_kernel(x_ref, w_ih_ref, w_hh_ref, b_ref, out_ref, xp_scr,
                 *, seq_len, batch, hidden_size):
    """Full-sequence LSTM forward. Gate order (i, f, g, o) matches PyTorch.

    x_ref:    (S*B, I)   flattened inputs (all timesteps)
    w_ih_ref: (I, 4H)    input-to-hidden weights, transposed
    w_hh_ref: (H, 4H)    hidden-to-hidden weights, transposed
    b_ref:    (1, 4H)    fused bias (b_ih + b_hh)
    out_ref:  (S, B, H)  full output sequence
    xp_scr:   (S*B, 4H)  VMEM scratch holding the precomputed input projection
    """
    S, B, H = seq_len, batch, hidden_size

    # One big MXU matmul for the input projection of every timestep; the fused
    # bias is added exactly once here (hoisted out of the recurrent loop).
    xp_scr[...] = (
        jnp.dot(x_ref[...], w_ih_ref[...], preferred_element_type=jnp.float32)
        + b_ref[...]
    )

    # Keep the (small) recurrent weight resident in vregs for the whole loop.
    w_hh = w_hh_ref[...]

    def step(t, carry):
        h_prev, c_prev = carry

        base = pl.multiple_of(t * B, B)
        gates = xp_scr[pl.ds(base, B), :] + jnp.dot(
            h_prev, w_hh, preferred_element_type=jnp.float32)   # (B, 4H)

        i_g = jax.nn.sigmoid(gates[:, 0 * H:1 * H])
        f_g = jax.nn.sigmoid(gates[:, 1 * H:2 * H])
        g_g = jnp.tanh(gates[:, 2 * H:3 * H])
        o_g = jax.nn.sigmoid(gates[:, 3 * H:4 * H])

        c_new = f_g * c_prev + i_g * g_g
        h_new = o_g * jnp.tanh(c_new)

        out_ref[t] = h_new.astype(out_ref.dtype)
        return (h_new, c_new)

    init = (jnp.zeros((B, H), jnp.float32),   # h_0
            jnp.zeros((B, H), jnp.float32))   # c_0
    jax.lax.fori_loop(0, S, step, init, unroll=True)


def gentle_push_late_lstm(x, w_ih, w_hh, b_ih, b_hh):
    """Forward pass of GentlePushLateLSTM (returns the full output sequence).

    Args:
      x:    (S, B, I) float32
      w_ih: (4H, I) float32   -- PyTorch nn.LSTM weight_ih_l0
      w_hh: (4H, H) float32   -- PyTorch nn.LSTM weight_hh_l0
      b_ih: (4H,)   float32
      b_hh: (4H,)   float32
    Returns:
      (S, B, H) float32
    """
    S, B, I = x.shape
    H4, _ = w_ih.shape
    H = H4 // 4

    # Glue (stays in plain JAX): pre-transpose weights so the kernel does plain
    # (M, K) @ (K, 4H) matmuls, fuse the two bias vectors, flatten x to (S*B, I)
    # so the in-kernel input projection is one MXU matmul with M = S*B.
    w_ih_t = jnp.asarray(w_ih, jnp.float32).T                    # (I, 4H)
    w_hh_t = jnp.asarray(w_hh, jnp.float32).T                    # (H, 4H)
    b = (jnp.asarray(b_ih, jnp.float32)
         + jnp.asarray(b_hh, jnp.float32)).reshape(1, 4 * H)     # (1, 4H)
    x_flat = jnp.asarray(x, jnp.float32).reshape(S * B, I)       # (S*B, I)

    kernel = functools.partial(_lstm_kernel, seq_len=S, batch=B, hidden_size=H)

    # TODO(synk): if H is scaled far beyond this toy size (H >~ 1024), tile the
    # resident W_hh^T along the 4H gate axis and bound vmem_limit_bytes.
    return pl.pallas_call(
        kernel,
        out_shape=jax.ShapeDtypeStruct((S, B, H), x.dtype),
        grid_spec=pltpu.PrefetchScalarGridSpec(
            num_scalar_prefetch=0,
            grid=(1,),   # single invocation; the time loop lives in the kernel
            in_specs=[
                pl.BlockSpec((S * B, I), lambda _: (0, 0)),      # x (all steps)
                pl.BlockSpec((I, 4 * H), lambda _: (0, 0)),      # W_ih^T
                pl.BlockSpec((H, 4 * H), lambda _: (0, 0)),      # W_hh^T
                pl.BlockSpec((1, 4 * H), lambda _: (0, 0)),      # fused bias
            ],
            out_specs=pl.BlockSpec((S, B, H), lambda _: (0, 0, 0)),
            scratch_shapes=[
                pltpu.VMEM((S * B, 4 * H), jnp.float32),         # x-projection
            ],
        ),
        compiler_params=pltpu.CompilerParams(
            dimension_semantics=("arbitrary",),
        ),
    )(x_flat, w_ih_t, w_hh_t, b)


def _lstm_reference(x, w_ih, w_hh, b_ih, b_hh):
    """Pure-JAX reference (PyTorch nn.LSTM semantics, zero initial state)."""
    H = w_hh.shape[1]

    def step(carry, x_t):
        h, c = carry
        gates = x_t @ w_ih.T + h @ w_hh.T + b_ih + b_hh
        i = jax.nn.sigmoid(gates[:, 0 * H:1 * H])
        f = jax.nn.sigmoid(gates[:, 1 * H:2 * H])
        g = jnp.tanh(gates[:, 2 * H:3 * H])
        o = jax.nn.sigmoid(gates[:, 3 * H:4 * H])
        c = f * c + i * g
        h = o * jnp.tanh(c)
        return (h, c), h

    B = x.shape[1]
    init = (jnp.zeros((B, H), jnp.float32), jnp.zeros((B, H), jnp.float32))
    _, hs = jax.lax.scan(step, init, x)
    return hs


if __name__ == "__main__":
    seq_len, batch, input_size, hidden_size = 8, 8, 16, 32

    key = jax.random.PRNGKey(0)
    k_x, k_wih, k_whh, k_bih, k_bhh = jax.random.split(key, 5)

    # Deterministic synthetic parameters (same shapes as nn.LSTM(input, hidden)).
    scale = 1.0 / jnp.sqrt(hidden_size)
    x = jax.random.normal(k_x, (seq_len, batch, input_size), jnp.float32)
    w_ih = jax.random.uniform(k_wih, (4 * hidden_size, input_size),
                              jnp.float32, -scale, scale)
    w_hh = jax.random.uniform(k_whh, (4 * hidden_size, hidden_size),
                              jnp.float32, -scale, scale)
    b_ih = jax.random.uniform(k_bih, (4 * hidden_size,), jnp.float32, -scale, scale)
    b_hh = jax.random.uniform(k_bhh, (4 * hidden_size,), jnp.float32, -scale, scale)

    out = gentle_push_late_lstm(x, w_ih, w_hh, b_ih, b_hh)
    out = jax.block_until_ready(out)

    ref = jax.block_until_ready(_lstm_reference(x, w_ih, w_hh, b_ih, b_hh))
    assert out.shape == (seq_len, batch, hidden_size)
    assert jnp.allclose(out, ref, atol=1e-5, rtol=1e-5), "mismatch vs reference"

    print("KERNEL_OK")
</pallas_src>

<mosaic_0001>
module attributes {stable_mosaic.version = 11 : i64} {
  func.func @_lstm_kernel(%arg0: i32, %arg1: memref<64x16xf32, #tpu.memory_space<vmem>>, %arg2: memref<16x128xf32, #tpu.memory_space<vmem>>, %arg3: memref<32x128xf32, #tpu.memory_space<vmem>>, %arg4: memref<1x128xf32, #tpu.memory_space<vmem>>, %arg5: memref<8x8x32xf32, #tpu.memory_space<vmem>>, %arg6: memref<64x128xf32, #tpu.memory_space<vmem>>) attributes {dimension_semantics = [#tpu.dimension_semantics<arbitrary>], iteration_bounds = array<i64: 1>, scalar_prefetch = 0 : i64, scratch_operands = 1 : i64, tpu.core_type = #tpu.core_type<tc>, window_params = [{pipeline_mode = #tpu.pipeline_mode<synchronous>, transform_indices = @transform_0, window_bounds = array<i64: 64, 16>}, {pipeline_mode = #tpu.pipeline_mode<synchronous>, transform_indices = @transform_1, window_bounds = array<i64: 16, 128>}, {pipeline_mode = #tpu.pipeline_mode<synchronous>, transform_indices = @transform_2, window_bounds = array<i64: 32, 128>}, {pipeline_mode = #tpu.pipeline_mode<synchronous>, transform_indices = @transform_3, window_bounds = array<i64: 1, 128>}, {pipeline_mode = #tpu.pipeline_mode<synchronous>, transform_indices = @transform_4, window_bounds = array<i64: 8, 8, 32>}]} {
    %c0 = arith.constant 0 : index
    %c0_0 = arith.constant 0 : index
    %0 = vector.load %arg1[%c0, %c0_0] : memref<64x16xf32, #tpu.memory_space<vmem>>, vector<64x16xf32>
    %c0_1 = arith.constant 0 : index
    %c0_2 = arith.constant 0 : index
    %1 = vector.load %arg2[%c0_1, %c0_2] : memref<16x128xf32, #tpu.memory_space<vmem>>, vector<16x128xf32>
    %cst = arith.constant dense<0.000000e+00> : vector<64x128xf32>
    %2 = tpu.matmul %0, %1, %cst {dimension_numbers = #tpu.dot_dimension_numbers<[1], [0], [0], [1], [0, 0, 1, 1], [], []>} : vector<64x16xf32>, vector<16x128xf32>, vector<64x128xf32> -> vector<64x128xf32>
    %c0_3 = arith.constant 0 : index
    %c0_4 = arith.constant 0 : index
    %3 = vector.load %arg4[%c0_3, %c0_4] : memref<1x128xf32, #tpu.memory_space<vmem>>, vector<1x128xf32>
    %4 = vector.broadcast %3 : vector<1x128xf32> to vector<64x128xf32>
    %5 = arith.addf %2, %4 : vector<64x128xf32>
    %c0_5 = arith.constant 0 : index
    %c0_6 = arith.constant 0 : index
    %6 = vector.load %arg6[%c0_5, %c0_6] : memref<64x128xf32, #tpu.memory_space<vmem>>, vector<64x128xf32>
    tpu.vector_store %arg6[%c0_5, %c0_6], %5 {strides = array<i32>} : memref<64x128xf32, #tpu.memory_space<vmem>>, vector<64x128xf32>,
    %c0_7 = arith.constant 0 : index
    %c0_8 = arith.constant 0 : index
    %7 = vector.load %arg3[%c0_7, %c0_8] : memref<32x128xf32, #tpu.memory_space<vmem>>, vector<32x128xf32>
    %cst_9 = arith.constant 0.000000e+00 : f32
    %8 = vector.broadcast %cst_9 : f32 to vector<8x32xf32>
    %cst_10 = arith.constant 0.000000e+00 : f32
    %9 = vector.broadcast %cst_10 : f32 to vector<8x32xf32>
    %c0_i32 = arith.constant 0 : i32
    %c8_i32 = arith.constant 8 : i32
    %10 = arith.muli %c0_i32, %c8_i32 : i32
    %11 = tpu.assume_multiple %10, 8 : i32
    %12 = arith.index_cast %11 : i32 to index
    %c0_11 = arith.constant 0 : index
    %13 = vector.load %arg6[%12, %c0_11] : memref<64x128xf32, #tpu.memory_space<vmem>>, vector<8x128xf32>
    %cst_12 = arith.constant dense<0.000000e+00> : vector<8x128xf32>
    %14 = tpu.matmul %8, %7, %cst_12 {dimension_numbers = #tpu.dot_dimension_numbers<[1], [0], [0], [1], [0, 0, 1, 1], [], []>} : vector<8x32xf32>, vector<32x128xf32>, vector<8x128xf32> -> vector<8x128xf32>
    %15 = arith.addf %13, %14 : vector<8x128xf32>
    %16 = vector.extract_strided_slice %15 {offsets = [0, 0], sizes = [8, 32], strides = [1, 1]} : vector<8x128xf32> to vector<8x32xf32>
    %17 = arith.negf %16 : vector<8x32xf32>
    %18 = math.exp %17 : vector<8x32xf32>
    %cst_13 = arith.constant 1.000000e+00 : f32
    %19 = vector.broadcast %cst_13 : f32 to vector<8x32xf32>
    %20 = arith.addf %19, %18 : vector<8x32xf32>
    %21 = arith.divf %19, %20 : vector<8x32xf32>
    %22 = vector.extract_strided_slice %15 {offsets = [0, 32], sizes = [8, 32], strides = [1, 1]} : vector<8x128xf32> to vector<8x32xf32>
    %23 = arith.negf %22 : vector<8x32xf32>
    %24 = math.exp %23 : vector<8x32xf32>
    %cst_14 = arith.constant 1.000000e+00 : f32
    %25 = vector.broadcast %cst_14 : f32 to vector<8x32xf32>
    %26 = arith.addf %25, %24 : vector<8x32xf32>
    %27 = arith.divf %25, %26 : vector<8x32xf32>
    %28 = vector.extract_strided_slice %15 {offsets = [0, 64], sizes = [8, 32], strides = [1, 1]} : vector<8x128xf32> to vector<8x32xf32>
    %29 = math.tanh %28 : vector<8x32xf32>
    %30 = vector.extract_strided_slice %15 {offsets = [0, 96], sizes = [8, 32], strides = [1, 1]} : vector<8x128xf32> to vector<8x32xf32>
    %31 = arith.negf %30 : vector<8x32xf32>
    %32 = math.exp %31 : vector<8x32xf32>
    %cst_15 = arith.constant 1.000000e+00 : f32
    %33 = vector.broadcast %cst_15 : f32 to vector<8x32xf32>
    %34 = arith.addf %33, %32 : vector<8x32xf32>
    %35 = arith.divf %33, %34 : vector<8x32xf32>
    %36 = arith.mulf %27, %9 : vector<8x32xf32>
    %37 = arith.mulf %21, %29 : vector<8x32xf32>
    %38 = arith.addf %36, %37 : vector<8x32xf32>
    %39 = math.tanh %38 : vector<8x32xf32>
    %40 = arith.mulf %35, %39 : vector<8x32xf32>
    %41 = arith.index_cast %c0_i32 : i32 to index
    %c0_16 = arith.constant 0 : index
    %c0_17 = arith.constant 0 : index
    %42 = vector.load %arg5[%41, %c0_16, %c0_17] : memref<8x8x32xf32, #tpu.memory_space<vmem>>, vector<1x8x32xf32>
    %43 = vector.shape_cast %42 : vector<1x8x32xf32> to vector<8x32xf32>
    %44 = vector.shape_cast %40 : vector<8x32xf32> to vector<1x8x32xf32>
    tpu.vector_store %arg5[%41, %c0_16, %c0_17], %44 {strides = array<i32>} : memref<8x8x32xf32, #tpu.memory_space<vmem>>, vector<1x8x32xf32>,
    %c1_i32 = arith.constant 1 : i32
    %c8_i32_18 = arith.constant 8 : i32
    %45 = arith.muli %c1_i32, %c8_i32_18 : i32
    %46 = tpu.assume_multiple %45, 8 : i32
    %47 = arith.index_cast %46 : i32 to index
    %c0_19 = arith.constant 0 : index
    %48 = vector.load %arg6[%47, %c0_19] : memref<64x128xf32, #tpu.memory_space<vmem>>, vector<8x128xf32>
    %cst_20 = arith.constant dense<0.000000e+00> : vector<8x128xf32>
    %49 = tpu.matmul %40, %7, %cst_20 {dimension_numbers = #tpu.dot_dimension_numbers<[1], [0], [0], [1], [0, 0, 1, 1], [], []>} : vector<8x32xf32>, vector<32x128xf32>, vector<8x128xf32> -> vector<8x128xf32>
    %50 = arith.addf %48, %49 : vector<8x128xf32>
    %51 = vector.extract_strided_slice %50 {offsets = [0, 0], sizes = [8, 32], strides = [1, 1]} : vector<8x128xf32> to vector<8x32xf32>
    %52 = arith.negf %51 : vector<8x32xf32>
    %53 = math.exp %52 : vector<8x32xf32>
    %cst_21 = arith.constant 1.000000e+00 : f32
    %54 = vector.broadcast %cst_21 : f32 to vector<8x32xf32>
    %55 = arith.addf %54, %53 : vector<8x32xf32>
    %56 = arith.divf %54, %55 : vector<8x32xf32>
    %57 = vector.extract_strided_slice %50 {offsets = [0, 32], sizes = [8, 32], strides = [1, 1]} : vector<8x128xf32> to vector<8x32xf32>
    %58 = arith.negf %57 : vector<8x32xf32>
    %59 = math.exp %58 : vector<8x32xf32>
    %cst_22 = arith.constant 1.000000e+00 : f32
    %60 = vector.broadcast %cst_22 : f32 to vector<8x32xf32>
    %61 = arith.addf %60, %59 : vector<8x32xf32>
    %62 = arith.divf %60, %61 : vector<8x32xf32>
    %63 = vector.extract_strided_slice %50 {offsets = [0, 64], sizes = [8, 32], strides = [1, 1]} : vector<8x128xf32> to vector<8x32xf32>
    %64 = math.tanh %63 : vector<8x32xf32>
    %65 = vector.extract_strided_slice %50 {offsets = [0, 96], sizes = [8, 32], strides = [1, 1]} : vector<8x128xf32> to vector<8x32xf32>
    %66 = arith.negf %65 : vector<8x32xf32>
    %67 = math.exp %66 : vector<8x32xf32>
    %cst_23 = arith.constant 1.000000e+00 : f32
    %68 = vector.broadcast %cst_23 : f32 to vector<8x32xf32>
    %69 = arith.addf %68, %67 : vector<8x32xf32>
    %70 = arith.divf %68, %69 : vector<8x32xf32>
    %71 = arith.mulf %62, %38 : vector<8x32xf32>
    %72 = arith.mulf %56, %64 : vector<8x32xf32>
    %73 = arith.addf %71, %72 : vector<8x32xf32>
    %74 = math.tanh %73 : vector<8x32xf32>
    %75 = arith.mulf %70, %74 : vector<8x32xf32>
    %76 = arith.index_cast %c1_i32 : i32 to index
    %c0_24 = arith.constant 0 : index
    %c0_25 = arith.constant 0 : index
    %77 = vector.load %arg5[%76, %c0_24, %c0_25] : memref<8x8x32xf32, #tpu.memory_space<vmem>>, vector<1x8x32xf32>
    %78 = vector.shape_cast %77 : vector<1x8x32xf32> to vector<8x32xf32>
    %79 = vector.shape_cast %75 : vector<8x32xf32> to vector<1x8x32xf32>
    tpu.vector_store %arg5[%76, %c0_24, %c0_25], %79 {strides = array<i32>} : memref<8x8x32xf32, #tpu.memory_space<vmem>>, vector<1x8x32xf32>,
    %c2_i32 = arith.constant 2 : i32
    %c8_i32_26 = arith.constant 8 : i32
    %80 = arith.muli %c2_i32, %c8_i32_26 : i32
    %81 = tpu.assume_multiple %80, 8 : i32
    %82 = arith.index_cast %81 : i32 to index
    %c0_27 = arith.constant 0 : index
    %83 = vector.load %arg6[%82, %c0_27] : memref<64x128xf32, #tpu.memory_space<vmem>>, vector<8x128xf32>
    %cst_28 = arith.constant dense<0.000000e+00> : vector<8x128xf32>
    %84 = tpu.matmul %75, %7, %cst_28 {dimension_numbers = #tpu.dot_dimension_numbers<[1], [0], [0], [1], [0, 0, 1, 1], [], []>} : vector<8x32xf32>, vector<32x128xf32>, vector<8x128xf32> -> vector<8x128xf32>
    %85 = arith.addf %83, %84 : vector<8x128xf32>
    %86 = vector.extract_strided_slice %85 {offsets = [0, 0], sizes = [8, 32], strides = [1, 1]} : vector<8x128xf32> to vector<8x32xf32>
    %87 = arith.negf %86 : vector<8x32xf32>
    %88 = math.exp %87 : vector<8x32xf32>
    %cst_29 = arith.constant 1.000000e+00 : f32
    %89 = vector.broadcast %cst_29 : f32 to vector<8x32xf32>
    %90 = arith.addf %89, %88 : vector<8x32xf32>
    %91 = arith.divf %89, %90 : vector<8x32xf32>
    %92 = vector.extract_strided_slice %85 {offsets = [0, 32], sizes = [8, 32], strides = [1, 1]} : vector<8x128xf32> to vector<8x32xf32>
    %93 = arith.negf %92 : vector<8x32xf32>
    %94 = math.exp %93 : vector<8x32xf32>
    %cst_30 = arith.constant 1.000000e+00 : f32
    %95 = vector.broadcast %cst_30 : f32 to vector<8x32xf32>
    %96 = arith.addf %95, %94 : vector<8x32xf32>
    %97 = arith.divf %95, %96 : vector<8x32xf32>
    %98 = vector.extract_strided_slice %85 {offsets = [0, 64], sizes = [8, 32], strides = [1, 1]} : vector<8x128xf32> to vector<8x32xf32>
    %99 = math.tanh %98 : vector<8x32xf32>
    %100 = vector.extract_strided_slice %85 {offsets = [0, 96], sizes = [8, 32], strides = [1, 1]} : vector<8x128xf32> to vector<8x32xf32>
    %101 = arith.negf %100 : vector<8x32xf32>
    %102 = math.exp %101 : vector<8x32xf32>
    %cst_31 = arith.constant 1.000000e+00 : f32
    %103 = vector.broadcast %cst_31 : f32 to vector<8x32xf32>
    %104 = arith.addf %103, %102 : vector<8x32xf32>
    %105 = arith.divf %103, %104 : vector<8x32xf32>
    %106 = arith.mulf %97, %73 : vector<8x32xf32>
    %107 = arith.mulf %91, %99 : vector<8x32xf32>
    %108 = arith.addf %106, %107 : vector<8x32xf32>
    %109 = math.tanh %108 : vector<8x32xf32>
    %110 = arith.mulf %105, %109 : vector<8x32xf32>
    %111 = arith.index_cast %c2_i32 : i32 to index
    %c0_32 = arith.constant 0 : index
    %c0_33 = arith.constant 0 : index
    %112 = vector.load %arg5[%111, %c0_32, %c0_33] : memref<8x8x32xf32, #tpu.memory_space<vmem>>, vector<1x8x32xf32>
    %113 = vector.shape_cast %112 : vector<1x8x32xf32> to vector<8x32xf32>
    %114 = vector.shape_cast %110 : vector<8x32xf32> to vector<1x8x32xf32>
    tpu.vector_store %arg5[%111, %c0_32, %c0_33], %114 {strides = array<i32>} : memref<8x8x32xf32, #tpu.memory_space<vmem>>, vector<1x8x32xf32>,
    %c3_i32 = arith.constant 3 : i32
    %c8_i32_34 = arith.constant 8 : i32
    %115 = arith.muli %c3_i32, %c8_i32_34 : i32
    %116 = tpu.assume_multiple %115, 8 : i32
    %117 = arith.index_cast %116 : i32 to index
    %c0_35 = arith.constant 0 : index
    %118 = vector.load %arg6[%117, %c0_35] : memref<64x128xf32, #tpu.memory_space<vmem>>, vector<8x128xf32>
    %cst_36 = arith.constant dense<0.000000e+00> : vector<8x128xf32>
    %119 = tpu.matmul %110, %7, %cst_36 {dimension_numbers = #tpu.dot_dimension_numbers<[1], [0], [0], [1], [0, 0, 1, 1], [], []>} : vector<8x32xf32>, vector<32x128xf32>, vector<8x128xf32> -> vector<8x128xf32>
    %120 = arith.addf %118, %119 : vector<8x128xf32>
    %121 = vector.extract_strided_slice %120 {offsets = [0, 0], sizes = [8, 32], strides = [1, 1]} : vector<8x128xf32> to vector<8x32xf32>
    %122 = arith.negf %121 : vector<8x32xf32>
    %123 = math.exp %122 : vector<8x32xf32>
    %cst_37 = arith.constant 1.000000e+00 : f32
    %124 = vector.broadcast %cst_37 : f32 to vector<8x32xf32>
    %125 = arith.addf %124, %123 : vector<8x32xf32>
    %126 = arith.divf %124, %125 : vector<8x32xf32>
    %127 = vector.extract_strided_slice %120 {offsets = [0, 32], sizes = [8, 32], strides = [1, 1]} : vector<8x128xf32> to vector<8x32xf32>
    %128 = arith.negf %127 : vector<8x32xf32>
    %129 = math.exp %128 : vector<8x32xf32>
    %cst_38 = arith.constant 1.000000e+00 : f32
    %130 = vector.broadcast %cst_38 : f32 to vector<8x32xf32>
    %131 = arith.addf %130, %129 : vector<8x32xf32>
    %132 = arith.divf %130, %131 : vector<8x32xf32>
    %133 = vector.extract_strided_slice %120 {offsets = [0, 64], sizes = [8, 32], strides = [1, 1]} : vector<8x128xf32> to vector<8x32xf32>
    %134 = math.tanh %133 : vector<8x32xf32>
    %135 = vector.extract_strided_slice %120 {offsets = [0, 96], sizes = [8, 32], strides = [1, 1]} : vector<8x128xf32> to vector<8x32xf32>
    %136 = arith.negf %135 : vector<8x32xf32>
    %137 = math.exp %136 : vector<8x32xf32>
    %cst_39 = arith.constant 1.000000e+00 : f32
    %138 = vector.broadcast %cst_39 : f32 to vector<8x32xf32>
    %139 = arith.addf %138, %137 : vector<8x32xf32>
    %140 = arith.divf %138, %139 : vector<8x32xf32>
    %141 = arith.mulf %132, %108 : vector<8x32xf32>
    %142 = arith.mulf %126, %134 : vector<8x32xf32>
    %143 = arith.addf %141, %142 : vector<8x32xf32>
    %144 = math.tanh %143 : vector<8x32xf32>
    %145 = arith.mulf %140, %144 : vector<8x32xf32>
    %146 = arith.index_cast %c3_i32 : i32 to index
    %c0_40 = arith.constant 0 : index
    %c0_41 = arith.constant 0 : index
    %147 = vector.load %arg5[%146, %c0_40, %c0_41] : memref<8x8x32xf32, #tpu.memory_space<vmem>>, vector<1x8x32xf32>
    %148 = vector.shape_cast %147 : vector<1x8x32xf32> to vector<8x32xf32>
    %149 = vector.shape_cast %145 : vector<8x32xf32> to vector<1x8x32xf32>
    tpu.vector_store %arg5[%146, %c0_40, %c0_41], %149 {strides = array<i32>} : memref<8x8x32xf32, #tpu.memory_space<vmem>>, vector<1x8x32xf32>,
    %c4_i32 = arith.constant 4 : i32
    %c8_i32_42 = arith.constant 8 : i32
    %150 = arith.muli %c4_i32, %c8_i32_42 : i32
    %151 = tpu.assume_multiple %150, 8 : i32
    %152 = arith.index_cast %151 : i32 to index
    %c0_43 = arith.constant 0 : index
    %153 = vector.load %arg6[%152, %c0_43] : memref<64x128xf32, #tpu.memory_space<vmem>>, vector<8x128xf32>
    %cst_44 = arith.constant dense<0.000000e+00> : vector<8x128xf32>
    %154 = tpu.matmul %145, %7, %cst_44 {dimension_numbers = #tpu.dot_dimension_numbers<[1], [0], [0], [1], [0, 0, 1, 1], [], []>} : vector<8x32xf32>, vector<32x128xf32>, vector<8x128xf32> -> vector<8x128xf32>
    %155 = arith.addf %153, %154 : vector<8x128xf32>
    %156 = vector.extract_strided_slice %155 {offsets = [0, 0], sizes = [8, 32], strides = [1, 1]} : vector<8x128xf32> to vector<8x32xf32>
    %157 = arith.negf %156 : vector<8x32xf32>
    %158 = math.exp %157 : vector<8x32xf32>
    %cst_45 = arith.constant 1.000000e+00 : f32
    %159 = vector.broadcast %cst_45 : f32 to vector<8x32xf32>
    %160 = arith.addf %159, %158 : vector<8x32xf32>
    %161 = arith.divf %159, %160 : vector<8x32xf32>
    %162 = vector.extract_strided_slice %155 {offsets = [0, 32], sizes = [8, 32], strides = [1, 1]} : vector<8x128xf32> to vector<8x32xf32>
    %163 = arith.negf %162 : vector<8x32xf32>
    %164 = math.exp %163 : vector<8x32xf32>
    %cst_46 = arith.constant 1.000000e+00 : f32
    %165 = vector.broadcast %cst_46 : f32 to vector<8x32xf32>
    %166 = arith.addf %165, %164 : vector<8x32xf32>
    %167 = arith.divf %165, %166 : vector<8x32xf32>
    %168 = vector.extract_strided_slice %155 {offsets = [0, 64], sizes = [8, 32], strides = [1, 1]} : vector<8x128xf32> to vector<8x32xf32>
    %169 = math.tanh %168 : vector<8x32xf32>
    %170 = vector.extract_strided_slice %155 {offsets = [0, 96], sizes = [8, 32], strides = [1, 1]} : vector<8x128xf32> to vector<8x32xf32>
    %171 = arith.negf %170 : vector<8x32xf32>
    %172 = math.exp %171 : vector<8x32xf32>
    %cst_47 = arith.constant 1.000000e+00 : f32
    %173 = vector.broadcast %cst_47 : f32 to vector<8x32xf32>
    %174 = arith.addf %173, %172 : vector<8x32xf32>
    %175 = arith.divf %173, %174 : vector<8x32xf32>
    %176 = arith.mulf %167, %143 : vector<8x32xf32>
    %177 = arith.mulf %161, %169 : vector<8x32xf32>
    %178 = arith.addf %176, %177 : vector<8x32xf32>
    %179 = math.tanh %178 : vector<8x32xf32>
    %180 = arith.mulf %175, %179 : vector<8x32xf32>
    %181 = arith.index_cast %c4_i32 : i32 to index
    %c0_48 = arith.constant 0 : index
    %c0_49 = arith.constant 0 : index
    %182 = vector.load %arg5[%181, %c0_48, %c0_49] : memref<8x8x32xf32, #tpu.memory_space<vmem>>, vector<1x8x32xf32>
    %183 = vector.shape_cast %182 : vector<1x8x32xf32> to vector<8x32xf32>
    %184 = vector.shape_cast %180 : vector<8x32xf32> to vector<1x8x32xf32>
    tpu.vector_store %arg5[%181, %c0_48, %c0_49], %184 {strides = array<i32>} : memref<8x8x32xf32, #tpu.memory_space<vmem>>, vector<1x8x32xf32>,
    %c5_i32 = arith.constant 5 : i32
    %c8_i32_50 = arith.constant 8 : i32
    %185 = arith.muli %c5_i32, %c8_i32_50 : i32
    %186 = tpu.assume_multiple %185, 8 : i32
    %187 = arith.index_cast %186 : i32 to index
    %c0_51 = arith.constant 0 : index
    %188 = vector.load %arg6[%187, %c0_51] : memref<64x128xf32, #tpu.memory_space<vmem>>, vector<8x128xf32>
    %cst_52 = arith.constant dense<0.000000e+00> : vector<8x128xf32>
    %189 = tpu.matmul %180, %7, %cst_52 {dimension_numbers = #tpu.dot_dimension_numbers<[1], [0], [0], [1], [0, 0, 1, 1], [], []>} : vector<8x32xf32>, vector<32x128xf32>, vector<8x128xf32> -> vector<8x128xf32>
    %190 = arith.addf %188, %189 : vector<8x128xf32>
    %191 = vector.extract_strided_slice %190 {offsets = [0, 0], sizes = [8, 32], strides = [1, 1]} : vector<8x128xf32> to vector<8x32xf32>
    %192 = arith.negf %191 : vector<8x32xf32>
    %193 = math.exp %192 : vector<8x32xf32>
    %cst_53 = arith.constant 1.000000e+00 : f32
    %194 = vector.broadcast %cst_53 : f32 to vector<8x32xf32>
    %195 = arith.addf %194, %193 : vector<8x32xf32>
    %196 = arith.divf %194, %195 : vector<8x32xf32>
    %197 = vector.extract_strided_slice %190 {offsets = [0, 32], sizes = [8, 32], strides = [1, 1]} : vector<8x128xf32> to vector<8x32xf32>
    %198 = arith.negf %197 : vector<8x32xf32>
    %199 = math.exp %198 : vector<8x32xf32>
    %cst_54 = arith.constant 1.000000e+00 : f32
    %200 = vector.broadcast %cst_54 : f32 to vector<8x32xf32>
    %201 = arith.addf %200, %199 : vector<8x32xf32>
    %202 = arith.divf %200, %201 : vector<8x32xf32>
    %203 = vector.extract_strided_slice %190 {offsets = [0, 64], sizes = [8, 32], strides = [1, 1]} : vector<8x128xf32> to vector<8x32xf32>
    %204 = math.tanh %203 : vector<8x32xf32>
    %205 = vector.extract_strided_slice %190 {offsets = [0, 96], sizes = [8, 32], strides = [1, 1]} : vector<8x128xf32> to vector<8x32xf32>
    %206 = arith.negf %205 : vector<8x32xf32>
    %207 = math.exp %206 : vector<8x32xf32>
    %cst_55 = arith.constant 1.000000e+00 : f32
    %208 = vector.broadcast %cst_55 : f32 to vector<8x32xf32>
    %209 = arith.addf %208, %207 : vector<8x32xf32>
    %210 = arith.divf %208, %209 : vector<8x32xf32>
    %211 = arith.mulf %202, %178 : vector<8x32xf32>
    %212 = arith.mulf %196, %204 : vector<8x32xf32>
    %213 = arith.addf %211, %212 : vector<8x32xf32>
    %214 = math.tanh %213 : vector<8x32xf32>
    %215 = arith.mulf %210, %214 : vector<8x32xf32>
    %216 = arith.index_cast %c5_i32 : i32 to index
    %c0_56 = arith.constant 0 : index
    %c0_57 = arith.constant 0 : index
    %217 = vector.load %arg5[%216, %c0_56, %c0_57] : memref<8x8x32xf32, #tpu.memory_space<vmem>>, vector<1x8x32xf32>
    %218 = vector.shape_cast %217 : vector<1x8x32xf32> to vector<8x32xf32>
    %219 = vector.shape_cast %215 : vector<8x32xf32> to vector<1x8x32xf32>
    tpu.vector_store %arg5[%216, %c0_56, %c0_57], %219 {strides = array<i32>} : memref<8x8x32xf32, #tpu.memory_space<vmem>>, vector<1x8x32xf32>,
    %c6_i32 = arith.constant 6 : i32
    %c8_i32_58 = arith.constant 8 : i32
    %220 = arith.muli %c6_i32, %c8_i32_58 : i32
    %221 = tpu.assume_multiple %220, 8 : i32
    %222 = arith.index_cast %221 : i32 to index
    %c0_59 = arith.constant 0 : index
    %223 = vector.load %arg6[%222, %c0_59] : memref<64x128xf32, #tpu.memory_space<vmem>>, vector<8x128xf32>
    %cst_60 = arith.constant dense<0.000000e+00> : vector<8x128xf32>
    %224 = tpu.matmul %215, %7, %cst_60 {dimension_numbers = #tpu.dot_dimension_numbers<[1], [0], [0], [1], [0, 0, 1, 1], [], []>} : vector<8x32xf32>, vector<32x128xf32>, vector<8x128xf32> -> vector<8x128xf32>
    %225 = arith.addf %223, %224 : vector<8x128xf32>
    %226 = vector.extract_strided_slice %225 {offsets = [0, 0], sizes = [8, 32], strides = [1, 1]} : vector<8x128xf32> to vector<8x32xf32>
    %227 = arith.negf %226 : vector<8x32xf32>
    %228 = math.exp %227 : vector<8x32xf32>
    %cst_61 = arith.constant 1.000000e+00 : f32
    %229 = vector.broadcast %cst_61 : f32 to vector<8x32xf32>
    %230 = arith.addf %229, %228 : vector<8x32xf32>
    %231 = arith.divf %229, %230 : vector<8x32xf32>
    %232 = vector.extract_strided_slice %225 {offsets = [0, 32], sizes = [8, 32], strides = [1, 1]} : vector<8x128xf32> to vector<8x32xf32>
    %233 = arith.negf %232 : vector<8x32xf32>
    %234 = math.exp %233 : vector<8x32xf32>
    %cst_62 = arith.constant 1.000000e+00 : f32
    %235 = vector.broadcast %cst_62 : f32 to vector<8x32xf32>
    %236 = arith.addf %235, %234 : vector<8x32xf32>
    %237 = arith.divf %235, %236 : vector<8x32xf32>
    %238 = vector.extract_strided_slice %225 {offsets = [0, 64], sizes = [8, 32], strides = [1, 1]} : vector<8x128xf32> to vector<8x32xf32>
    %239 = math.tanh %238 : vector<8x32xf32>
    %240 = vector.extract_strided_slice %225 {offsets = [0, 96], sizes = [8, 32], strides = [1, 1]} : vector<8x128xf32> to vector<8x32xf32>
    %241 = arith.negf %240 : vector<8x32xf32>
    %242 = math.exp %241 : vector<8x32xf32>
    %cst_63 = arith.constant 1.000000e+00 : f32
    %243 = vector.broadcast %cst_63 : f32 to vector<8x32xf32>
    %244 = arith.addf %243, %242 : vector<8x32xf32>
    %245 = arith.divf %243, %244 : vector<8x32xf32>
    %246 = arith.mulf %237, %213 : vector<8x32xf32>
    %247 = arith.mulf %231, %239 : vector<8x32xf32>
    %248 = arith.addf %246, %247 : vector<8x32xf32>
    %249 = math.tanh %248 : vector<8x32xf32>
    %250 = arith.mulf %245, %249 : vector<8x32xf32>
    %251 = arith.index_cast %c6_i32 : i32 to index
    %c0_64 = arith.constant 0 : index
    %c0_65 = arith.constant 0 : index
    %252 = vector.load %arg5[%251, %c0_64, %c0_65] : memref<8x8x32xf32, #tpu.memory_space<vmem>>, vector<1x8x32xf32>
    %253 = vector.shape_cast %252 : vector<1x8x32xf32> to vector<8x32xf32>
    %254 = vector.shape_cast %250 : vector<8x32xf32> to vector<1x8x32xf32>
    tpu.vector_store %arg5[%251, %c0_64, %c0_65], %254 {strides = array<i32>} : memref<8x8x32xf32, #tpu.memory_space<vmem>>, vector<1x8x32xf32>,
    %c7_i32 = arith.constant 7 : i32
    %c8_i32_66 = arith.constant 8 : i32
    %255 = arith.muli %c7_i32, %c8_i32_66 : i32
    %256 = tpu.assume_multiple %255, 8 : i32
    %257 = arith.index_cast %256 : i32 to index
    %c0_67 = arith.constant 0 : index
    %258 = vector.load %arg6[%257, %c0_67] : memref<64x128xf32, #tpu.memory_space<vmem>>, vector<8x128xf32>
    %cst_68 = arith.constant dense<0.000000e+00> : vector<8x128xf32>
    %259 = tpu.matmul %250, %7, %cst_68 {dimension_numbers = #tpu.dot_dimension_numbers<[1], [0], [0], [1], [0, 0, 1, 1], [], []>} : vector<8x32xf32>, vector<32x128xf32>, vector<8x128xf32> -> vector<8x128xf32>
    %260 = arith.addf %258, %259 : vector<8x128xf32>
    %261 = vector.extract_strided_slice %260 {offsets = [0, 0], sizes = [8, 32], strides = [1, 1]} : vector<8x128xf32> to vector<8x32xf32>
    %262 = arith.negf %261 : vector<8x32xf32>
    %263 = math.exp %262 : vector<8x32xf32>
    %cst_69 = arith.constant 1.000000e+00 : f32
    %264 = vector.broadcast %cst_69 : f32 to vector<8x32xf32>
    %265 = arith.addf %264, %263 : vector<8x32xf32>
    %266 = arith.divf %264, %265 : vector<8x32xf32>
    %267 = vector.extract_strided_slice %260 {offsets = [0, 32], sizes = [8, 32], strides = [1, 1]} : vector<8x128xf32> to vector<8x32xf32>
    %268 = arith.negf %267 : vector<8x32xf32>
    %269 = math.exp %268 : vector<8x32xf32>
    %cst_70 = arith.constant 1.000000e+00 : f32
    %270 = vector.broadcast %cst_70 : f32 to vector<8x32xf32>
    %271 = arith.addf %270, %269 : vector<8x32xf32>
    %272 = arith.divf %270, %271 : vector<8x32xf32>
    %273 = vector.extract_strided_slice %260 {offsets = [0, 64], sizes = [8, 32], strides = [1, 1]} : vector<8x128xf32> to vector<8x32xf32>
    %274 = math.tanh %273 : vector<8x32xf32>
    %275 = vector.extract_strided_slice %260 {offsets = [0, 96], sizes = [8, 32], strides = [1, 1]} : vector<8x128xf32> to vector<8x32xf32>
    %276 = arith.negf %275 : vector<8x32xf32>
    %277 = math.exp %276 : vector<8x32xf32>
    %cst_71 = arith.constant 1.000000e+00 : f32
    %278 = vector.broadcast %cst_71 : f32 to vector<8x32xf32>
    %279 = arith.addf %278, %277 : vector<8x32xf32>
    %280 = arith.divf %278, %279 : vector<8x32xf32>
    %281 = arith.mulf %272, %248 : vector<8x32xf32>
    %282 = arith.mulf %266, %274 : vector<8x32xf32>
    %283 = arith.addf %281, %282 : vector<8x32xf32>
    %284 = math.tanh %283 : vector<8x32xf32>
    %285 = arith.mulf %280, %284 : vector<8x32xf32>
    %286 = arith.index_cast %c7_i32 : i32 to index
    %c0_72 = arith.constant 0 : index
    %c0_73 = arith.constant 0 : index
    %287 = vector.load %arg5[%286, %c0_72, %c0_73] : memref<8x8x32xf32, #tpu.memory_space<vmem>>, vector<1x8x32xf32>
    %288 = vector.shape_cast %287 : vector<1x8x32xf32> to vector<8x32xf32>
    %289 = vector.shape_cast %285 : vector<8x32xf32> to vector<1x8x32xf32>
    tpu.vector_store %arg5[%286, %c0_72, %c0_73], %289 {strides = array<i32>} : memref<8x8x32xf32, #tpu.memory_space<vmem>>, vector<1x8x32xf32>,
    %c8_i32_74 = arith.constant 8 : i32
    return
  }
  func.func @transform_0(%arg0: i32) -> (i32, i32) {
    %c0_i32 = arith.constant 0 : i32
    %c0_i32_0 = arith.constant 0 : i32
    %c0_i32_1 = arith.constant 0 : i32
    return %c0_i32, %c0_i32_0 : i32, i32
  }
  func.func @transform_1(%arg0: i32) -> (i32, i32) {
    %c0_i32 = arith.constant 0 : i32
    %c0_i32_0 = arith.constant 0 : i32
    %c0_i32_1 = arith.constant 0 : i32
    return %c0_i32, %c0_i32_0 : i32, i32
  }
  func.func @transform_2(%arg0: i32) -> (i32, i32) {
    %c0_i32 = arith.constant 0 : i32
    %c0_i32_0 = arith.constant 0 : i32
    %c0_i32_1 = arith.constant 0 : i32
    return %c0_i32, %c0_i32_0 : i32, i32
  }
  func.func @transform_3(%arg0: i32) -> (i32, i32) {
    %c0_i32 = arith.constant 0 : i32
    %c0_i32_0 = arith.constant 0 : i32
    %c0_i32_1 = arith.constant 0 : i32
    return %c0_i32, %c0_i32_0 : i32, i32
  }
  func.func @transform_4(%arg0: i32) -> (i32, i32, i32) {
    %c0_i32 = arith.constant 0 : i32
    %c0_i32_0 = arith.constant 0 : i32
    %c0_i32_1 = arith.constant 0 : i32
    %c0_i32_2 = arith.constant 0 : i32
    return %c0_i32, %c0_i32_0, %c0_i32_1 : i32, i32, i32
  }
}

</mosaic_0001>

<bundles_post_ra>
// kernel: tpu_custom_call.1
= control target key start
LH: loop header
LB: loop body
LE: loop exit
PB: predicated region body
PF: predicated region fallthrough
CT: control target
= control target key end

     0   :  { %vm35_vm0 = vcmask 130048   ;;  %v1359_v3 = vmov 0.0|0.0   ;;  %vm1360_vm1 = vmmov 0   ;;  %v1361_v10 = vmov 0.0   ;;  %s1579_s0 = inlined_call_operand.vmem [shape: f32[64,16], index: 0, kind: input, shape index: {}]   ;;  %s1580_s1 = inlined_call_operand.vmem [shape: f32[16,128], index: 1, kind: input, shape index: {}]   ;;  %s1581_s2 = inlined_call_operand.vmem [shape: f32[32,128], index: 2, kind: input, shape index: {}]   ;;  %s1582_s3 = inlined_call_operand.vmem [shape: f32[1,128], index: 3, kind: input, shape index: {}]   ;;  %s1583_s4 = inlined_call_operand.hbm [shape: f32[8,8,32], index: 4, kind: output, shape index: {}]  }
   0x1   :  { %v26_v0 = vld [vmem:[%s1580_s1] sm:$0xff]  ;;  %v27_v1 = vld [vmem:[%s1580_s1 + $0x8] sm:$0xff]  ;;  %1215 = vmatprep.subr.bf16.mxu1 %v1359_v3  ;;  %v175_v8 = vld [vmem:[%s1581_s2 + $0x10] sm:$0xff]  ;;  %1131 = vmatprep.mubr.msk.f32.mxu1 %vm1360_vm1, %v1361_v10 }
   0x2   :  { %v173_v2 = vld [vmem:[%s1581_s2] sm:$0xff]  ;;  %v1211_v4 = vpack.c.bf16 %v27_v1, %v26_v0  ;;  %v174_v5 = vld [vmem:[%s1581_s2 + $0x8] sm:$0xff]  ;;  %v176_v9 = vld [vmem:[%s1581_s2 + $0x18] sm:$0xff] }
   0x3   :  { %v18_v6 = vld [vmem:[%s1579_s0] sm:$0xff]  ;;  %v1408_v7 = vpack.c.bf16 %v174_v5, %v173_v2 }
   0x4   :  { %1111 = vmatprep.mubr.msk.f32.mxu0 %vm35_vm0, %v18_v6 }
   0x5   :  { %9 = vsyncpa [#allocation4], 0  ;;  %1212 = vmatprep.subr.bf16.mxu0 %v1211_v4  ;;  %1217 = vmatpush3.bf16.msra.mxu1 %v1408_v7  ;;  %v19_v11 = vld [vmem:[%s1579_s0 + $0x8] sm:$0xff]  ;;  %v1423_v12 = vpack.c.bf16 %v176_v9, %v175_v8  ;;  %v1444_v13 = vld [vmem:[%s1582_s3] ss:$0 sm:$0xff]  ;;  %s1362_s5 = smov 64  }
   0x6   :  { %1214 = vmatpush3.bf16.msra.mxu0 %v1211_v4  ;;  %1218 = vmatprep.subr.bf16.mxu1 %v1359_v3  ;;  %s1363_s3 = smov 32   ;;  %vm178_vm2 = vcmask 261120   ;;  %v20_v48 = vld [vmem:[%s1579_s0 + $0x10] sm:$0xff]  ;;  %v21_v49 = vld [vmem:[%s1579_s0 + $0x18] sm:$0xff]  ;;  %v22_v50 = vld [vmem:[%s1579_s0 + $0x20] sm:$0xff] }
   0x7   :  { %1227 = vmatprep.subr.bf16.mxu0 %v1359_v3  ;;  %v23_v51 = vld [vmem:[%s1579_s0 + $0x28] sm:$0xff]  ;;  %v24_v52 = vld [vmem:[%s1579_s0 + $0x30] sm:$0xff]  ;;  %v25_v53 = vld [vmem:[%s1579_s0 + $0x38] sm:$0xff]  ;;  %s1364_s0 = smov [#allocation3]  }
   0x8   :  { %s1022_s18 = sshll.u32 %s1364_s0, 4  ;;  %s1023_s18 = int_to_ptr.vmem [resolvable:$true] %s1022_s18 }
   0x9   :  { %1112 = vmatmul.mubr.msk.f32.vlgmr.msra.gmra.mrb[0].mxu0 %vm35_vm0, %v19_v11  ;;  %1220 = vmatpush3.bf16.msra.mxu1 %v1423_v12  ;;  %s1335_s19 = scalar_lea.vmem %s1023_s18, 1024  ;;  %p1340_p1 = scmp.lt.s32.totalorder %s1023_s18, %s1023_s18 }
   0xa   :  { %1229 = vmatpush3.bf16.msra.mxu0 %v1408_v7  ;;  %1221 = vmatprep.subr.bf16.mxu1 %v1359_v3  ;;  %p1336_p0 = scmp.ne.s32.totalorder %s1023_s18, %s1335_s19  ;;  %p1341_p2 = scmp.lt.s32.totalorder %s1335_s19, %s1335_s19 }
   0xb   :  { %1230 = vmatprep.subr.bf16.mxu0 %v1359_v3  ;;  %1114 = vmatprep.mubr.msk.f32.mxu0 %vm35_vm0, %v20_v48 }
   0xc   :  { %1132 = vmatmul.mubr.f32.vlgmr.msra.gmra.mrb[0].mxu1 %v1361_v10  ;;  %p1342_p3 = por %p1341_p2, %p1340_p1 }
   0xd   :  { %1223 = vmatpush3.bf16.msra.mxu1 %v1408_v7  ;;  %1142 = vmatprep.mubr.msk.f32.mxu1 %vm1360_vm1, %v1361_v10 }
   0xe   :  { %1224 = vmatprep.subr.bf16.mxu1 %v1359_v3  ;;  %1232 = vmatpush3.bf16.msra.mxu0 %v1423_v12  ;;  %p1343_p4 = pnand %p1342_p3, %p1336_p0 }
   0xf   :  { %1239 = vmatprep.subr.bf16.mxu0 %v1359_v3  ;;  %1115 = vmatmul.mubr.msk.f32.gmra.mrb[2].mxu0 %vm35_vm0, %v21_v49 }
  0x10   :  { %1117 = vmatprep.mubr.msk.f32.mxu0 %vm35_vm0, %v22_v50 }
  0x11   :  { %1226 = vmatpush3.bf16.msra.mxu1 %v1423_v12 }
  0x12   :  { %1233 = vmatprep.subr.bf16.mxu1 %v1359_v3 }
  0x13   :  { %1118 = vmatmul.mubr.msk.f32.gmra.mrb[4].mxu0 %vm35_vm0, %v23_v51 }
  0x14   :  { %1120 = vmatprep.mubr.msk.f32.mxu0 %vm35_vm0, %v24_v52 }
  0x17   :  { %1121 = vmatmul.mubr.msk.f32.gmra.mrb[6].mxu0 %vm35_vm0, %v25_v53 }
  0x18   :  { %1153 = vmatprep.mubr.msk.f32.mxu0 %vm1360_vm1, %v1361_v10 }
  0xdc   :  { %v1113_v14 = vpop.f32.mrb[0].mxu0 }
  0xdd   :  { %v126_v15 = vpop.f32.mrb[1].mxu0  ;;  %v132_v34 = vadd.f32 %v1113_v14, %v1444_v13 }
  0xde   :  { %v127_v16 = vadd.f32 %v1444_v13, %v126_v15 }
  0xdf   :  { %v248_v17 = vpop.f32.mrb[0].mxu1 }
  0xe0   :  { %v252_v18 = vadd.f32 %v248_v17, %v127_v16  ;;  %v1133_v19 = vpop.f32.mrb[1].mxu1 }
  0xe2   :  { %1271 = vtanh.f32 %v252_v18  ;;  %v1042_v21 = vmul.f32 -1.442695, %v252_v18  ;;  %v1116_v57 = vpop.f32.mrb[2].mxu0 }
  0xe3   :  { %v136_v58 = vpop.f32.mrb[3].mxu0 }
  0xe4   :  { %1273 = vpow2.f32 %v1042_v21  ;;  %v137_v0 = vadd.f32 %v1444_v13, %v136_v58 }
  0xe6   :  { %v1490_v59 = vpop.f32.mrb[4].mxu0 }
  0xe7   :  { %v1492_v60 = vpop.f32.mrb[5].mxu0 }
  0xea   :  { %v1494_v61 = vpop.f32.mrb[6].mxu0 }
  0xeb   :  { %v1496_v62 = vpop.f32.mrb[7].mxu0 }
  0xec   :  { %v1272_v20 = vpop.eup %1271 }
  0xed   :  { %262 = vrot.lane.b32.xlu0 %v1272_v20, %s1362_s5 }
  0xee   :  { %v1274_v22 = vpop.eup %1273 }
  0xef   :  { %v256_v23 = vadd.f32 1.0, %v1274_v22 }
  0xf1   :  { %1275 = vrcp.f32 %v256_v23  ;;  %v142_v23 = vadd.f32 %v1116_v57, %v1444_v13 }
  0xfb   :  { %v1276_v24 = vpop.eup %1275 }
  0xfc   :  { %v260_v27 = vmul.f32 0.0, %v1276_v24 }
 0x15f   :  { %v263_v25 = vpop.permute.xlu0 %262 }
 0x160   :  { %v265_v26 = vmul.f32 %v1276_v24, %v263_v25 }
 0x162   :  { %267 = vrot.lane.b32.xlu0 %v265_v26, %s1363_s3 }
 0x1d4   :  { %v268_v28 = vpop.permute.xlu0 %267 }
 0x1d5   :  { %v270_v29 = vadd.f32 %v268_v28, %v260_v27 }
 0x1d7   :  { %1277 = vtanh.f32 %v270_v29 }
 0x1e1   :  { %v1278_v30 = vpop.eup %1277 }
 0x1e2   :  { %273 = vrot.lane.b32.xlu1 %v1278_v30, %s1362_s5 }
 0x254   :  { %v274_v31 = vpop.permute.xlu1 %273 }
 0x255   :  { %v276_v32 = vmul.f32 %v1276_v24, %v274_v31 }
 0x257   :  { %278 = vrot.lane.b32.xlu1 %v276_v32, %s1363_s3 }
 0x2c9   :  { %v279_v33 = vpop.permute.xlu1 %278 }
 0x2ca   :  { %281 = vst.msk [vmem:[#allocation3] sm:$0xff] %vm178_vm2, %v279_v33  ;;  %1143 = vmatmul.mubr.msk.f32.vlgmr.msra.gmra.mrb[2].mxu1 %vm178_vm2, %v279_v33 }
 0x2cb   :  { %1235 = vmatpush3.bf16.msra.mxu1 %v1408_v7  ;;  %1164 = vmatprep.mubr.msk.f32.mxu1 %vm1360_vm1, %v1361_v10 }
 0x2cc   :  { %1236 = vmatprep.subr.bf16.mxu1 %v1359_v3 }
 0x2cf   :  { %1238 = vmatpush3.bf16.msra.mxu1 %v1423_v12 }
 0x2d0   :  { %1245 = vmatprep.subr.bf16.mxu1 %v1359_v3 }
 0x39d   :  { %v352_v35 = vpop.f32.mrb[2].mxu1 }
 0x39e   :  { %v356_v36 = vadd.f32 %v352_v35, %v132_v34  ;;  %v1144_v37 = vpop.f32.mrb[3].mxu1 }
 0x3a0   :  { %1279 = vtanh.f32 %v356_v36  ;;  %v1044_v39 = vmul.f32 -1.442695, %v356_v36 }
 0x3a2   :  { %1281 = vpow2.f32 %v1044_v39 }
 0x3aa   :  { %v1280_v38 = vpop.eup %1279 }
 0x3ab   :  { %366 = vrot.lane.b32.xlu0 %v1280_v38, %s1362_s5 }
 0x3ac   :  { %v1282_v40 = vpop.eup %1281 }
 0x3ad   :  { %v360_v41 = vadd.f32 1.0, %v1282_v40 }
 0x3af   :  { %1283 = vrcp.f32 %v360_v41  ;;  %v147_v41 = vadd.f32 %v1444_v13, %v1492_v60  ;;  %v152_v60 = vadd.f32 %v1490_v59, %v1444_v13 }
 0x3b9   :  { %v1284_v42 = vpop.eup %1283 }
 0x3ba   :  { %v364_v45 = vmul.f32 %v1284_v42, %v270_v29 }
 0x41d   :  { %v367_v43 = vpop.permute.xlu0 %366 }
 0x41e   :  { %v369_v44 = vmul.f32 %v1284_v42, %v367_v43 }
 0x420   :  { %371 = vrot.lane.b32.xlu1 %v369_v44, %s1363_s3 }
 0x492   :  { %v372_v46 = vpop.permute.xlu1 %371 }
 0x493   :  { %v374_v47 = vadd.f32 %v372_v46, %v364_v45 }
 0x495   :  { %1285 = vtanh.f32 %v374_v47 }
 0x49f   :  { %v1286_v54 = vpop.eup %1285 }
 0x4a0   :  { %377 = vrot.lane.b32.xlu0 %v1286_v54, %s1362_s5 }
 0x512   :  { %v378_v55 = vpop.permute.xlu0 %377 }
 0x513   :  { %v380_v56 = vmul.f32 %v1284_v42, %v378_v55 }
 0x515   :  { %382 = vrot.lane.b32.xlu1 %v380_v56, %s1363_s3 }
 0x587   :  { %v383_v63 = vpop.permute.xlu1 %382 }
 0x588   :  { %386 = vst.msk [vmem:[#allocation3 + $0x8] sm:$0xff] %vm178_vm2, %v383_v63  ;;  %1154 = vmatmul.mubr.msk.f32.vlgmr.msra.gmra.mrb[8].mxu0 %vm178_vm2, %v383_v63 }
 0x589   :  { %1241 = vmatpush3.bf16.msra.mxu0 %v1408_v7  ;;  %1175 = vmatprep.mubr.msk.f32.mxu0 %vm1360_vm1, %v1361_v10 }
 0x58a   :  { %1242 = vmatprep.subr.bf16.mxu0 %v1359_v3 }
 0x58d   :  { %1244 = vmatpush3.bf16.msra.mxu0 %v1423_v12 }
 0x58e   :  { %1251 = vmatprep.subr.bf16.mxu0 %v1359_v3 }
 0x65b   :  { %v457_v1 = vpop.f32.mrb[8].mxu0 }
 0x65c   :  { %v461_v2 = vadd.f32 %v457_v1, %v137_v0  ;;  %v1155_v4 = vpop.f32.mrb[9].mxu0 }
 0x65e   :  { %1287 = vtanh.f32 %v461_v2  ;;  %v1046_v6 = vmul.f32 -1.442695, %v461_v2 }
 0x660   :  { %1289 = vpow2.f32 %v1046_v6 }
 0x668   :  { %v1288_v5 = vpop.eup %1287 }
 0x669   :  { %471 = vrot.lane.b32.xlu0 %v1288_v5, %s1362_s5 }
 0x66a   :  { %v1290_v8 = vpop.eup %1289 }
 0x66b   :  { %v465_v9 = vadd.f32 1.0, %v1290_v8 }
 0x66d   :  { %1291 = vrcp.f32 %v465_v9 }
 0x677   :  { %v1292_v11 = vpop.eup %1291 }
 0x678   :  { %v469_v16 = vmul.f32 %v1292_v11, %v374_v47 }
 0x6db   :  { %v472_v14 = vpop.permute.xlu0 %471 }
 0x6dc   :  { %v474_v15 = vmul.f32 %v1292_v11, %v472_v14 }
 0x6de   :  { %476 = vrot.lane.b32.xlu1 %v474_v15, %s1363_s3 }
 0x750   :  { %v477_v17 = vpop.permute.xlu1 %476 }
 0x751   :  { %v479_v18 = vadd.f32 %v477_v17, %v469_v16  ;;  %v157_v16 = vadd.f32 %v1444_v13, %v1496_v62 }
 0x753   :  { %1293 = vtanh.f32 %v479_v18 }
 0x75d   :  { %v1294_v19 = vpop.eup %1293 }
 0x75e   :  { %482 = vrot.lane.b32.xlu0 %v1294_v19, %s1362_s5 }
 0x7d0   :  { %v483_v20 = vpop.permute.xlu0 %482 }
 0x7d1   :  { %v485_v21 = vmul.f32 %v1292_v11, %v483_v20 }
 0x7d3   :  { %487 = vrot.lane.b32.xlu1 %v485_v21, %s1363_s3 }
 0x845   :  { %v488_v22 = vpop.permute.xlu1 %487 }
 0x846   :  { %491 = vst.msk [vmem:[#allocation3 + $0x10] sm:$0xff] %vm178_vm2, %v488_v22  ;;  %1165 = vmatmul.mubr.msk.f32.vlgmr.msra.gmra.mrb[4].mxu1 %vm178_vm2, %v488_v22 }
 0x847   :  { %1247 = vmatpush3.bf16.msra.mxu1 %v1408_v7  ;;  %1186 = vmatprep.mubr.msk.f32.mxu1 %vm1360_vm1, %v1361_v10 }
 0x848   :  { %1248 = vmatprep.subr.bf16.mxu1 %v1359_v3 }
 0x84b   :  { %1250 = vmatpush3.bf16.msra.mxu1 %v1423_v12 }
 0x84c   :  { %1257 = vmatprep.subr.bf16.mxu1 %v1359_v3 }
 0x919   :  { %v562_v24 = vpop.f32.mrb[4].mxu1 }
 0x91a   :  { %v566_v25 = vadd.f32 %v562_v24, %v142_v23  ;;  %v1166_v26 = vpop.f32.mrb[5].mxu1 }
 0x91c   :  { %1295 = vtanh.f32 %v566_v25  ;;  %v1048_v28 = vmul.f32 -1.442695, %v566_v25 }
 0x91e   :  { %1297 = vpow2.f32 %v1048_v28 }
 0x926   :  { %v1296_v27 = vpop.eup %1295 }
 0x927   :  { %576 = vrot.lane.b32.xlu0 %v1296_v27, %s1362_s5 }
 0x928   :  { %v1298_v29 = vpop.eup %1297 }
 0x929   :  { %v570_v30 = vadd.f32 1.0, %v1298_v29 }
 0x92b   :  { %1299 = vrcp.f32 %v570_v30 }
 0x935   :  { %v1300_v31 = vpop.eup %1299 }
 0x936   :  { %v574_v34 = vmul.f32 %v1300_v31, %v479_v18 }
 0x999   :  { %v577_v32 = vpop.permute.xlu0 %576 }
 0x99a   :  { %v579_v33 = vmul.f32 %v1300_v31, %v577_v32 }
 0x99c   :  { %581 = vrot.lane.b32.xlu1 %v579_v33, %s1363_s3  ;;  %v162_v33 = vadd.f32 %v1494_v61, %v1444_v13 }
 0xa0e   :  { %v582_v35 = vpop.permute.xlu1 %581 }
 0xa0f   :  { %v584_v36 = vadd.f32 %v582_v35, %v574_v34 }
 0xa11   :  { %1301 = vtanh.f32 %v584_v36 }
 0xa1b   :  { %v1302_v37 = vpop.eup %1301 }
 0xa1c   :  { %587 = vrot.lane.b32.xlu0 %v1302_v37, %s1362_s5 }
 0xa8e   :  { %v588_v38 = vpop.permute.xlu0 %587 }
 0xa8f   :  { %v590_v39 = vmul.f32 %v1300_v31, %v588_v38 }
 0xa91   :  { %592 = vrot.lane.b32.xlu1 %v590_v39, %s1363_s3 }
 0xb03   :  { %v593_v40 = vpop.permute.xlu1 %592 }
 0xb04   :  { %596 = vst.msk [vmem:[#allocation3 + $0x18] sm:$0xff] %vm178_vm2, %v593_v40  ;;  %1176 = vmatmul.mubr.msk.f32.vlgmr.msra.gmra.mrb[10].mxu0 %vm178_vm2, %v593_v40 }
 0xb05   :  { %1253 = vmatpush3.bf16.msra.mxu0 %v1408_v7  ;;  %1197 = vmatprep.mubr.msk.f32.mxu0 %vm1360_vm1, %v1361_v10 }
 0xb06   :  { %1254 = vmatprep.subr.bf16.mxu0 %v1359_v3 }
 0xb09   :  { %1256 = vmatpush3.bf16.msra.mxu0 %v1423_v12 }
 0xbd7   :  { %v667_v42 = vpop.f32.mrb[10].mxu0 }
 0xbd8   :  { %v671_v43 = vadd.f32 %v667_v42, %v147_v41  ;;  %v1177_v44 = vpop.f32.mrb[11].mxu0 }
 0xbda   :  { %1303 = vtanh.f32 %v671_v43  ;;  %v1050_v46 = vmul.f32 -1.442695, %v671_v43 }
 0xbdc   :  { %1305 = vpow2.f32 %v1050_v46 }
 0xbe4   :  { %v1304_v45 = vpop.eup %1303 }
 0xbe5   :  { %681 = vrot.lane.b32.xlu0 %v1304_v45, %s1362_s5 }
 0xbe6   :  { %v1306_v47 = vpop.eup %1305 }
 0xbe7   :  { %v675_v48 = vadd.f32 1.0, %v1306_v47 }
 0xbe9   :  { %1307 = vrcp.f32 %v675_v48 }
 0xbf3   :  { %v1308_v49 = vpop.eup %1307 }
 0xbf4   :  { %v679_v52 = vmul.f32 %v1308_v49, %v584_v36 }
 0xc57   :  { %v682_v50 = vpop.permute.xlu0 %681 }
 0xc58   :  { %v684_v51 = vmul.f32 %v1308_v49, %v682_v50 }
 0xc5a   :  { %686 = vrot.lane.b32.xlu1 %v684_v51, %s1363_s3 }
 0xccc   :  { %v687_v53 = vpop.permute.xlu1 %686 }
 0xccd   :  { %v689_v54 = vadd.f32 %v687_v53, %v679_v52 }
 0xccf   :  { %1309 = vtanh.f32 %v689_v54 }
 0xcd9   :  { %v1310_v55 = vpop.eup %1309 }
 0xcda   :  { %692 = vrot.lane.b32.xlu0 %v1310_v55, %s1362_s5 }
 0xd4c   :  { %v693_v56 = vpop.permute.xlu0 %692 }
 0xd4d   :  { %v695_v57 = vmul.f32 %v1308_v49, %v693_v56 }
 0xd4f   :  { %697 = vrot.lane.b32.xlu1 %v695_v57, %s1363_s3 }
 0xdc1   :  { %v698_v58 = vpop.permute.xlu1 %697 }
 0xdc2   :  { %701 = vst.msk [vmem:[#allocation3 + $0x20] sm:$0xff] %vm178_vm2, %v698_v58  ;;  %1187 = vmatmul.mubr.msk.f32.vlgmr.msra.gmra.mrb[6].mxu1 %vm178_vm2, %v698_v58 }
 0xdc3   :  { %1259 = vmatpush3.bf16.msra.mxu1 %v1408_v7  ;;  %1208 = vmatprep.mubr.msk.f32.mxu1 %vm1360_vm1, %v1361_v10 }
 0xdc4   :  { %1260 = vmatprep.subr.bf16.mxu1 %v1359_v3 }
 0xdc7   :  { %1262 = vmatpush3.bf16.msra.mxu1 %v1423_v12 }
 0xe95   :  { %v772_v63 = vpop.f32.mrb[6].mxu1 }
 0xe96   :  { %v776_v0 = vadd.f32 %v772_v63, %v152_v60  ;;  %v1188_v1 = vpop.f32.mrb[7].mxu1 }
 0xe98   :  { %1311 = vtanh.f32 %v776_v0  ;;  %v1052_v4 = vmul.f32 -1.442695, %v776_v0 }
 0xe9a   :  { %1313 = vpow2.f32 %v1052_v4 }
 0xea2   :  { %v1312_v2 = vpop.eup %1311 }
 0xea3   :  { %786 = vrot.lane.b32.xlu0 %v1312_v2, %s1362_s5 }
 0xea4   :  { %v1314_v7 = vpop.eup %1313 }
 0xea5   :  { %v780_v5 = vadd.f32 1.0, %v1314_v7 }
 0xea7   :  { %1315 = vrcp.f32 %v780_v5 }
 0xeb1   :  { %v1316_v10 = vpop.eup %1315 }
 0xeb2   :  { %v784_v12 = vmul.f32 %v1316_v10, %v689_v54 }
 0xf15   :  { %v787_v6 = vpop.permute.xlu0 %786 }
 0xf16   :  { %v789_v3 = vmul.f32 %v1316_v10, %v787_v6 }
 0xf18   :  { %791 = vrot.lane.b32.xlu1 %v789_v3, %s1363_s3 }
 0xf8a   :  { %v792_v8 = vpop.permute.xlu1 %791 }
 0xf8b   :  { %v794_v59 = vadd.f32 %v792_v8, %v784_v12 }
 0xf8d   :  { %1317 = vtanh.f32 %v794_v59 }
 0xf97   :  { %v1318_v9 = vpop.eup %1317 }
 0xf98   :  { %797 = vrot.lane.b32.xlu0 %v1318_v9, %s1362_s5 }
0x100a   :  { %v798_v11 = vpop.permute.xlu0 %797 }
0x100b   :  { %v800_v14 = vmul.f32 %v1316_v10, %v798_v11 }
0x100d   :  { %802 = vrot.lane.b32.xlu1 %v800_v14, %s1363_s3 }
0x107f   :  { %v803_v15 = vpop.permute.xlu1 %802 }
0x1080   :  { %806 = vst.msk [vmem:[#allocation3 + $0x28] sm:$0xff] %vm178_vm2, %v803_v15  ;;  %1198 = vmatmul.mubr.msk.f32.vlgmr.msra.gmra.mrb[12].mxu0 %vm178_vm2, %v803_v15 }
0x1153   :  { %v877_v17 = vpop.f32.mrb[12].mxu0 }
0x1154   :  { %v881_v18 = vadd.f32 %v877_v17, %v157_v16  ;;  %v1199_v19 = vpop.f32.mrb[13].mxu0 }
0x1156   :  { %1319 = vtanh.f32 %v881_v18  ;;  %v1054_v21 = vmul.f32 -1.442695, %v881_v18 }
0x1158   :  { %1321 = vpow2.f32 %v1054_v21 }
0x1160   :  { %v1320_v20 = vpop.eup %1319 }
0x1161   :  { %891 = vrot.lane.b32.xlu0 %v1320_v20, %s1362_s5 }
0x1162   :  { %v1322_v22 = vpop.eup %1321 }
0x1163   :  { %v885_v23 = vadd.f32 1.0, %v1322_v22 }
0x1165   :  { %1323 = vrcp.f32 %v885_v23 }
0x116f   :  { %v1324_v24 = vpop.eup %1323 }
0x1170   :  { %v889_v27 = vmul.f32 %v1324_v24, %v794_v59 }
0x11d3   :  { %v892_v25 = vpop.permute.xlu0 %891 }
0x11d4   :  { %v894_v26 = vmul.f32 %v1324_v24, %v892_v25 }
0x11d6   :  { %896 = vrot.lane.b32.xlu1 %v894_v26, %s1363_s3 }
0x1248   :  { %v897_v28 = vpop.permute.xlu1 %896 }
0x1249   :  { %v899_v62 = vadd.f32 %v897_v28, %v889_v27 }
0x124b   :  { %1325 = vtanh.f32 %v899_v62 }
0x1255   :  { %v1326_v29 = vpop.eup %1325 }
0x1256   :  { %902 = vrot.lane.b32.xlu0 %v1326_v29, %s1362_s5 }
0x12c8   :  { %v903_v30 = vpop.permute.xlu0 %902 }
0x12c9   :  { %v905_v31 = vmul.f32 %v1324_v24, %v903_v30 }
0x12cb   :  { %907 = vrot.lane.b32.xlu1 %v905_v31, %s1363_s3 }
0x133d   :  { %v908_v32 = vpop.permute.xlu1 %907 }
0x133e   :  { %911 = vst.msk [vmem:[#allocation3 + $0x30] sm:$0xff] %vm178_vm2, %v908_v32  ;;  %1209 = vmatmul.mubr.msk.f32.vlgmr.msra.gmra.mrb[8].mxu1 %vm178_vm2, %v908_v32 }
0x1411   :  { %v982_v34 = vpop.f32.mrb[8].mxu1 }
0x1412   :  { %v986_v35 = vadd.f32 %v982_v34, %v162_v33  ;;  %v1210_v36 = vpop.f32.mrb[9].mxu1 }
0x1414   :  { %1327 = vtanh.f32 %v986_v35  ;;  %v1056_v38 = vmul.f32 -1.442695, %v986_v35 }
0x1416   :  { %1329 = vpow2.f32 %v1056_v38 }
0x141e   :  { %v1328_v37 = vpop.eup %1327 }
0x141f   :  { %996 = vrot.lane.b32.xlu0 %v1328_v37, %s1362_s5 }
0x1420   :  { %v1330_v39 = vpop.eup %1329 }
0x1421   :  { %v990_v40 = vadd.f32 1.0, %v1330_v39 }
0x1423   :  { %1331 = vrcp.f32 %v990_v40 }
0x142d   :  { %v1332_v41 = vpop.eup %1331 }
0x142e   :  { %v994_v44 = vmul.f32 %v1332_v41, %v899_v62 }
0x1491   :  { %v997_v42 = vpop.permute.xlu0 %996 }
0x1492   :  { %v999_v43 = vmul.f32 %v1332_v41, %v997_v42 }
0x1494   :  { %1001 = vrot.lane.b32.xlu1 %v999_v43, %s1363_s3 }
0x1506   :  { %v1002_v45 = vpop.permute.xlu1 %1001 }
0x1507   :  { %v1004_v13 = vadd.f32 %v1002_v45, %v994_v44 }
0x1509   :  { %1333 = vtanh.f32 %v1004_v13 }
0x1513   :  { %v1334_v61 = vpop.eup %1333 }
0x1514   :  { %1007 = vrot.lane.b32.xlu0 %v1334_v61, %s1362_s5 }
0x1586   :  { %v1008_v46 = vpop.permute.xlu0 %1007 }
0x1587   :  { %v1010_v47 = vmul.f32 %v1332_v41, %v1008_v46 }
0x1589   :  { %1012 = vrot.lane.b32.xlu1 %v1010_v47, %s1363_s3 }
0x15fb   :  { %v1013_v48 = vpop.permute.xlu1 %1012 }
0x15fc   :  { %1016 = vst.msk [vmem:[#allocation3 + $0x38] sm:$0xff] %vm178_vm2, %v1013_v48 }
0x15fd   :  { %1346 = shalt.err (!%p1343_p4)
}
0x15fe   :  { %s1347_s22 = scalar_lea.hbm %s1583_s4, 1024 }
0x15ff   :  { %p1348_p5 = scmp.ne.s32.totalorder %s1583_s4, %s1347_s22  ;;  %p1351_p6 = scmp.lt.u32.totalorder %s1347_s22, %s1583_s4 }
0x1601   :  { %p1353_p7 = pnand %p1351_p6, %p1348_p5 }
0x1603   :  { %1356 = shalt.err (!%p1353_p7)
}
0x1604   :  { %s1365_s26 = smov 128   ;;  %s1366_s27 = smov 8  }
0x1605   :  { %1028 = dma.vmem_to_hbm [thread:$0]  %s1023_s18, 1024, %s1583_s4, [#allocation4], %s1365_s26, %s1365_s26, %s1366_s27  }
0x1606   :  { %1357 = dma.done.wait [#allocation4], 1024  }
0x1607   :  { %1358 = vsyncadd [#allocation4], 4294966272 }
0x1608   :  { %1032 = vsyncpa [#allocation4], 1 }

</bundles_post_ra>
